<compile_context>
chip_gen: v7x
topology: tpu7x:2x2x1
jax: 0.10.0
libtpu: 0.0.40
codegen_flags: <defaults>
</compile_context>

<pallas_src>
import functools

import jax
import jax.numpy as jnp
from jax.experimental import pallas as pl
from jax.experimental.pallas import tpu as pltpu


# ----------------------------------------------------------------------------
# Fused Pallas kernel: cnn0 -> cnn1 -> cnn2 -> cnn3 for one batch element
# ----------------------------------------------------------------------------
def _head_fused_kernel(xs_ref, seam_ref, k0_ref, b0_ref, k1_ref, b1_ref,
                       k2_ref, b2_ref, k3_ref, b3_ref, *refs,
                       w_pad, slope, emit_features):
    """All feature maps are flat (C, row*w_pad) rasters; M = h_out*w_pad lanes.

    xs_ref : (1, 4*Cp, Hp*Wp)  space-to-depth input, zero-extended to (Hp, Wp)
    seam   : (1, Mp) f32       1.0 on valid columns, 0.0 on the 2 seam columns
    k*     : (Cout, taps*Cin)  stacked-K weights (bf16)
    b*     : (Cout, 1) f32     biases
    outputs: (1, Cout, Mp) f32 (x0/x1/x2 only when emit_features)
    scratch: pad_ref (CH, (Hp+1)*Wp) bf16  padded feature-map buffer
    """
    if emit_features:
        x0_ref, x1_ref, x2_ref, y3_ref, pad_ref = refs
    else:
        y3_ref, pad_ref = refs
        x0_ref = x1_ref = x2_ref = None

    mp = seam_ref.shape[-1]
    mask = seam_ref[...]                           # (1, mp)

    # Zero borders + overflow tail once; interiors are overwritten per layer
    # and the masked shifted store keeps the borders zero afterwards.
    pad_ref[...] = jnp.zeros_like(pad_ref)

    def conv(load, k, w_ref, b_ref, act):
        # Build the (taps*Cin, Mp) patch matrix from contiguous lane slices
        # (no reshape, no per-tap relayout copy), one stacked-K MXU matmul.
        slabs = [load(ky * w_pad + kx) for ky in range(k) for kx in range(k)]
        patches = jnp.concatenate(slabs, axis=0)
        acc = jnp.dot(w_ref[...], patches, preferred_element_type=jnp.float32)
        acc = (acc + b_ref[...]) * mask            # bias + zero seam columns
        if act:
            acc = jnp.where(acc >= 0.0, acc, acc * slope)   # LeakyReLU (f32)
        return acc                                 # (cout, mp) f32

    def to_pad(v):
        # Shifted store: interior rows land at (row+1, col+1); masked zeros
        # land exactly on the left/right pad columns of the next layer input.
        pad_ref[:, pl.ds(w_pad + 1, mp)] = v.astype(pad_ref.dtype)

    # cnn0: Conv2d(C,16,3,s=2,p=1) as 2x2 stride-1 taps over the s2d input.
    x0 = conv(lambda off: xs_ref[0, :, pl.ds(off, mp)], 2, k0_ref, b0_ref, True)
    if emit_features:
        x0_ref[0] = x0
    to_pad(x0)

    # cnn1 / cnn2: Conv2d(16,16,3,1,1), intermediates stay in VMEM.
    x1 = conv(lambda off: pad_ref[:, pl.ds(off, mp)], 3, k1_ref, b1_ref, True)
    if emit_features:
        x1_ref[0] = x1
    to_pad(x1)

    x2 = conv(lambda off: pad_ref[:, pl.ds(off, mp)], 3, k2_ref, b2_ref, True)
    if emit_features:
        x2_ref[0] = x2
    to_pad(x2)

    # cnn3: ConvTranspose2d(16,4,4,2,1) as a phase-packed 3x3-tap conv
    # (depth-to-space happens in the XLA wrapper).
    y3_ref[0] = conv(lambda off: pad_ref[:, pl.ds(off, mp)], 3,
                     k3_ref, b3_ref, False)


# ----------------------------------------------------------------------------
# Parameter preparation (done once): torch layouts -> stacked-K tap matrices
# ----------------------------------------------------------------------------
def init_head_params(key, num_channels=3, num_hidden=16, out_channels=4):
    ks = jax.random.split(key, 8)
    scale = 0.1
    return {
        "w0": scale * jax.random.normal(ks[0], (num_hidden, num_channels, 3, 3), jnp.float32),
        "b0": scale * jax.random.normal(ks[1], (num_hidden,), jnp.float32),
        "w1": scale * jax.random.normal(ks[2], (num_hidden, num_hidden, 3, 3), jnp.float32),
        "b1": scale * jax.random.normal(ks[3], (num_hidden,), jnp.float32),
        "w2": scale * jax.random.normal(ks[4], (num_hidden, num_hidden, 3, 3), jnp.float32),
        "b2": scale * jax.random.normal(ks[5], (num_hidden,), jnp.float32),
        # ConvTranspose2d weight layout: (Cin, Cout, kH, kW)
        "w3": scale * jax.random.normal(ks[6], (num_hidden, out_channels, 4, 4), jnp.float32),
        "b3": scale * jax.random.normal(ks[7], (out_channels,), jnp.float32),
    }


def prepare_head_kernel_params(params, dtype=jnp.bfloat16):
    """Repack torch-layout weights into stacked-K (Cout, taps*Cin) matrices."""
    w0 = params["w0"]
    c_hidden, c_in, kh0, kw0 = w0.shape
    c_pad = -(-c_in // 4) * 4              # 4*c_pad is a multiple of 16 (bf16 tile)

    # cnn0: stride-2 3x3 conv -> 2x2 taps over the space-to-depth input whose
    # channel layout is (a, b, c) with phase xp[2i+a, 2j+b, c].
    k0 = jnp.zeros((c_hidden, 2, 2, 2, 2, c_pad), jnp.float32)   # (o,dy,dx,a,b,c)
    for dy in range(2):
        for dx in range(2):
            for a in range(2):
                for b in range(2):
                    ky, kx = 2 * dy + a, 2 * dx + b
                    if ky < kh0 and kx < kw0:
                        k0 = k0.at[:, dy, dx, a, b, :c_in].set(w0[:, :, ky, kx])
    k0 = k0.reshape(c_hidden, 16 * c_pad)

    def conv3x3(w):                         # (cout,cin,3,3) -> (cout, 9*cin)
        cout, cin, kh, kw = w.shape
        return jnp.transpose(w, (0, 2, 3, 1)).reshape(cout, kh * kw * cin)

    # cnn3: ConvTranspose2d(k=4,s=2,p=1) -> stride-1 3x3 taps producing 4*Cout
    # phase-packed channels (a,b,o); phase (a,b) lands at (2m+a, 2n+b).
    w3 = params["w3"]
    cin3, cout3, KH, KW = w3.shape
    k3 = jnp.zeros((2, 2, cout3, 3, 3, cin3), jnp.float32)       # (a,b,o,r,s,c)
    for a in range(2):
        for b in range(2):
            for r in range(3):
                for s in range(3):
                    ky, kx = a + 3 - 2 * r, b + 3 - 2 * s
                    if 0 <= ky < KH and 0 <= kx < KW:
                        k3 = k3.at[a, b, :, r, s, :].set(w3[:, :, ky, kx].T)
    k3 = k3.reshape(4 * cout3, 9 * cin3)

    col = lambda v: v.reshape(-1, 1).astype(jnp.float32)
    return {
        "w0": k0.astype(dtype), "b0": col(params["b0"]),
        "w1": conv3x3(params["w1"]).astype(dtype), "b1": col(params["b1"]),
        "w2": conv3x3(params["w2"]).astype(dtype), "b2": col(params["b2"]),
        "w3": k3.astype(dtype), "b3": col(jnp.tile(params["b3"], 4)),
    }


# ----------------------------------------------------------------------------
# Head forward
# ----------------------------------------------------------------------------
def head_forward(kparams, x_nchw, relu_slope=0.2, return_features=False):
    """Forward pass of Head. x_nchw: (B, C, H, W), H and W even."""
    act_dtype = kparams["w1"].dtype
    B, C, H, W = x_nchw.shape
    assert H % 2 == 0 and W % 2 == 0, "Head expects even spatial dims"
    h0, w0 = H // 2, W // 2
    hp, wp = h0 + 2, w0 + 2
    mp = h0 * wp
    ch = kparams["w1"].shape[0]
    c_pad = kparams["w0"].shape[1] // 16
    cout3 = kparams["w3"].shape[0] // 4

    # --- XLA-side prep (tiny 3-channel image): pad + space-to-depth, zero-
    # extended to the same (hp, wp) raster as the hidden layers and flattened
    # so the kernel never reshapes. ---
    xp = jnp.pad(x_nchw, ((0, 0), (0, 0), (1, 1), (1, 1)))
    phases = [jnp.pad(xp[:, :, a::2, b::2],
                      ((0, 0), (0, c_pad - C), (0, 0), (0, 0)))
              for a in range(2) for b in range(2)]
    xs2d = jnp.concatenate(phases, axis=1)                     # (B,4Cp,h0+1,w0+1)
    xs2d = jnp.pad(xs2d, ((0, 0), (0, 0), (0, 1), (0, 1)))     # (B,4Cp,hp,wp)
    xs2d = xs2d.reshape(B, 4 * c_pad, hp * wp).astype(act_dtype)

    # Seam mask: within each output row of width wp, columns >= w0 are garbage.
    seam = jnp.tile((jnp.arange(wp) < w0).astype(jnp.float32), h0).reshape(1, mp)

    kernel = functools.partial(_head_fused_kernel, w_pad=wp, slope=relu_slope,
                               emit_features=return_features)

    feat_sds = jax.ShapeDtypeStruct((B, ch, mp), jnp.float32)
    y3_sds = jax.ShapeDtypeStruct((B, 4 * cout3, mp), jnp.float32)
    feat_spec = pl.BlockSpec((1, ch, mp), lambda i: (i, 0, 0))
    y3_spec = pl.BlockSpec((1, 4 * cout3, mp), lambda i: (i, 0, 0))
    if return_features:
        out_shape = (feat_sds, feat_sds, feat_sds, y3_sds)
        out_specs = (feat_spec, feat_spec, feat_spec, y3_spec)
    else:
        out_shape = y3_sds
        out_specs = y3_spec

    full = lambda shp: pl.BlockSpec(shp, lambda i, _s=shp: tuple(0 for _ in _s))

    outs = pl.pallas_call(
        kernel,
        out_shape=out_shape,
        grid_spec=pltpu.PrefetchScalarGridSpec(
            num_scalar_prefetch=0,
            grid=(B,),
            in_specs=[
                pl.BlockSpec((1, 4 * c_pad, hp * wp), lambda i: (i, 0, 0)),
                full((1, mp)),                                  # seam mask
                full(kparams["w0"].shape), full((ch, 1)),
                full(kparams["w1"].shape), full((ch, 1)),
                full(kparams["w2"].shape), full((ch, 1)),
                full(kparams["w3"].shape), full((4 * cout3, 1)),
            ],
            out_specs=out_specs,
            # Padded feature-map buffer (+1 spare row for seam-tap overreads).
            scratch_shapes=[pltpu.VMEM((ch, (hp + 1) * wp), act_dtype)],
        ),
        compiler_params=pltpu.CompilerParams(
            dimension_semantics=("parallel",)),
    )(xs2d, seam, kparams["w0"], kparams["b0"], kparams["w1"], kparams["b1"],
      kparams["w2"], kparams["b2"], kparams["w3"], kparams["b3"])

    # --- XLA-side epilogue: drop seam columns, depth-to-space for cnn3 ---
    if return_features:
        x0f, x1f, x2f, y3 = outs
    else:
        y3 = outs
    y = y3.reshape(B, 2, 2, cout3, h0, wp)[..., :w0]            # (B,a,b,o,m,n)
    x3 = jnp.transpose(y, (0, 3, 4, 1, 5, 2)).reshape(B, cout3, 2 * h0, 2 * w0)

    if return_features:
        unflat = lambda t: t.reshape(B, ch, h0, wp)[..., :w0]   # already NCHW
        return unflat(x0f), unflat(x1f), unflat(x2f), x3
    return x3


# ----------------------------------------------------------------------------
# Pure-JAX reference (lax convs, f32) for the correctness check
# ----------------------------------------------------------------------------
def _ref_forward(params, x_nchw, slope=0.2):
    x = jnp.transpose(x_nchw, (0, 2, 3, 1))
    hp = jax.lax.Precision.HIGHEST

    def conv(h, w_oihw, b, stride, pad):
        w_hwio = jnp.transpose(w_oihw, (2, 3, 1, 0))
        y = jax.lax.conv_general_dilated(
            h, w_hwio, (stride, stride), ((pad, pad), (pad, pad)),
            dimension_numbers=("NHWC", "HWIO", "NHWC"), precision=hp)
        return y + b

    lrelu = lambda v: jnp.where(v >= 0, v, v * slope)
    h = lrelu(conv(x, params["w0"], params["b0"], 2, 1))
    h = lrelu(conv(h, params["w1"], params["b1"], 1, 1))
    h = lrelu(conv(h, params["w2"], params["b2"], 1, 1))
    w = params["w3"]
    w_hwio = jnp.transpose(w[:, :, ::-1, ::-1], (2, 3, 0, 1))
    y = jax.lax.conv_general_dilated(
        h, w_hwio, (1, 1), ((2, 2), (2, 2)), lhs_dilation=(2, 2),
        dimension_numbers=("NHWC", "HWIO", "NHWC"), precision=hp)
    y = y + params["b3"]
    return jnp.transpose(y, (0, 3, 1, 2))


if __name__ == "__main__":
    key = jax.random.PRNGKey(0)
    k_param, k_x = jax.random.split(key)
    params = init_head_params(k_param, num_channels=3, num_hidden=16, out_channels=4)
    kparams = prepare_head_kernel_params(params)

    # Small NCHW input consistent with the module: batch=2, channels=3, 16x16.
    x = jax.random.normal(k_x, (2, 3, 16, 16), jnp.float32)

    fwd = jax.jit(head_forward, static_argnames=("relu_slope", "return_features"))
    out = jax.block_until_ready(fwd(kparams, x))
    assert out.shape == (2, 4, 16, 16), out.shape

    ref = jax.block_until_ready(_ref_forward(params, x))
    # Tolerance sized for bf16 weight/activation storage; accumulation is f32.
    err = float(jnp.max(jnp.abs(out - ref)))
    assert jnp.allclose(out, ref, atol=5e-2, rtol=5e-2), err

    # return_features path (post-activation features, matching torch's inplace
    # LeakyReLU); x3 must still match the reference.
    feats = jax.block_until_ready(fwd(kparams, x, return_features=True))
    assert feats[0].shape == (2, 16, 8, 8) and feats[1].shape == (2, 16, 8, 8)
    assert feats[2].shape == (2, 16, 8, 8) and feats[3].shape == (2, 4, 16, 16)
    assert jnp.allclose(feats[3], ref, atol=5e-2, rtol=5e-2)

    print("KERNEL_OK")
</pallas_src>

<mosaic_0001>
module attributes {stable_mosaic.version = 11 : i64} {
  func.func @_head_fused_kernel(%arg0: i32, %arg1: memref<1x16x100xbf16, #tpu.memory_space<vmem>>, %arg2: memref<1x80xf32, #tpu.memory_space<vmem>>, %arg3: memref<16x64xbf16, #tpu.memory_space<vmem>>, %arg4: memref<16x1xf32, #tpu.memory_space<vmem>>, %arg5: memref<16x144xbf16, #tpu.memory_space<vmem>>, %arg6: memref<16x1xf32, #tpu.memory_space<vmem>>, %arg7: memref<16x144xbf16, #tpu.memory_space<vmem>>, %arg8: memref<16x1xf32, #tpu.memory_space<vmem>>, %arg9: memref<16x144xbf16, #tpu.memory_space<vmem>>, %arg10: memref<16x1xf32, #tpu.memory_space<vmem>>, %arg11: memref<1x16x80xf32, #tpu.memory_space<vmem>>, %arg12: memref<16x110xbf16, #tpu.memory_space<vmem>>) attributes {dimension_semantics = [#tpu.dimension_semantics<parallel>], iteration_bounds = array<i64: 2>, scalar_prefetch = 0 : i64, scratch_operands = 1 : i64, tpu.core_type = #tpu.core_type<tc>, window_params = [{transform_indices = @transform_0, window_bounds = array<i64: 1, 16, 100>}, {pipeline_mode = #tpu.pipeline_mode<synchronous>, transform_indices = @transform_1, window_bounds = array<i64: 1, 80>}, {pipeline_mode = #tpu.pipeline_mode<synchronous>, transform_indices = @transform_2, window_bounds = array<i64: 16, 64>}, {pipeline_mode = #tpu.pipeline_mode<synchronous>, transform_indices = @transform_3, window_bounds = array<i64: 16, 1>}, {pipeline_mode = #tpu.pipeline_mode<synchronous>, transform_indices = @transform_4, window_bounds = array<i64: 16, 144>}, {pipeline_mode = #tpu.pipeline_mode<synchronous>, transform_indices = @transform_5, window_bounds = array<i64: 16, 1>}, {pipeline_mode = #tpu.pipeline_mode<synchronous>, transform_indices = @transform_6, window_bounds = array<i64: 16, 144>}, {pipeline_mode = #tpu.pipeline_mode<synchronous>, transform_indices = @transform_7, window_bounds = array<i64: 16, 1>}, {pipeline_mode = #tpu.pipeline_mode<synchronous>, transform_indices = @transform_8, window_bounds = array<i64: 16, 144>}, {pipeline_mode = #tpu.pipeline_mode<synchronous>, transform_indices = @transform_9, window_bounds = array<i64: 16, 1>}, {transform_indices = @transform_10, window_bounds = array<i64: 1, 16, 80>}]} {
    %c0 = arith.constant 0 : index
    %c0_0 = arith.constant 0 : index
    %0 = vector.load %arg2[%c0, %c0_0] : memref<1x80xf32, #tpu.memory_space<vmem>>, vector<1x80xf32>
    %cst = arith.constant 0.000000e+00 : bf16
    %1 = vector.broadcast %cst : bf16 to vector<16x110xbf16>
    %c0_1 = arith.constant 0 : index
    %c0_2 = arith.constant 0 : index
    %2 = vector.load %arg12[%c0_1, %c0_2] : memref<16x110xbf16, #tpu.memory_space<vmem>>, vector<16x110xbf16>
    tpu.vector_store %arg12[%c0_1, %c0_2], %1 {strides = array<i32>} : memref<16x110xbf16, #tpu.memory_space<vmem>>, vector<16x110xbf16>,
    %c0_3 = arith.constant 0 : index
    %c0_4 = arith.constant 0 : index
    %c0_5 = arith.constant 0 : index
    %3 = vector.load %arg1[%c0_3, %c0_4, %c0_5] : memref<1x16x100xbf16, #tpu.memory_space<vmem>>, vector<1x16x80xbf16>
    %4 = vector.shape_cast %3 : vector<1x16x80xbf16> to vector<16x80xbf16>
    %c0_6 = arith.constant 0 : index
    %c0_7 = arith.constant 0 : index
    %c1 = arith.constant 1 : index
    %5 = vector.load %arg1[%c0_6, %c0_7, %c1] : memref<1x16x100xbf16, #tpu.memory_space<vmem>>, vector<1x16x80xbf16>
    %6 = vector.shape_cast %5 : vector<1x16x80xbf16> to vector<16x80xbf16>
    %c0_8 = arith.constant 0 : index
    %c0_9 = arith.constant 0 : index
    %c10 = arith.constant 10 : index
    %7 = vector.load %arg1[%c0_8, %c0_9, %c10] : memref<1x16x100xbf16, #tpu.memory_space<vmem>>, vector<1x16x80xbf16>
    %8 = vector.shape_cast %7 : vector<1x16x80xbf16> to vector<16x80xbf16>
    %c0_10 = arith.constant 0 : index
    %c0_11 = arith.constant 0 : index
    %c11 = arith.constant 11 : index
    %9 = vector.load %arg1[%c0_10, %c0_11, %c11] : memref<1x16x100xbf16, #tpu.memory_space<vmem>>, vector<1x16x80xbf16>
    %10 = vector.shape_cast %9 : vector<1x16x80xbf16> to vector<16x80xbf16>
    %11 = tpu.concatenate %4, %6, %8, %10 in 0 : vector<16x80xbf16>, vector<16x80xbf16>, vector<16x80xbf16>, vector<16x80xbf16> -> vector<64x80xbf16>
    %c0_12 = arith.constant 0 : index
    %c0_13 = arith.constant 0 : index
    %12 = vector.load %arg3[%c0_12, %c0_13] : memref<16x64xbf16, #tpu.memory_space<vmem>>, vector<16x64xbf16>
    %cst_14 = arith.constant dense<0.000000e+00> : vector<16x80xf32>
    %13 = tpu.matmul %12, %11, %cst_14 {dimension_numbers = #tpu.dot_dimension_numbers<[1], [0], [0], [1], [0, 0, 1, 1], [], []>} : vector<16x64xbf16>, vector<64x80xbf16>, vector<16x80xf32> -> vector<16x80xf32>
    %c0_15 = arith.constant 0 : index
    %c0_16 = arith.constant 0 : index
    %14 = vector.load %arg4[%c0_15, %c0_16] : memref<16x1xf32, #tpu.memory_space<vmem>>, vector<16x1xf32>
    %15 = vector.broadcast %14 : vector<16x1xf32> to vector<16x80xf32>
    %16 = arith.addf %13, %15 : vector<16x80xf32>
    %17 = vector.broadcast %0 : vector<1x80xf32> to vector<16x80xf32>
    %18 = arith.mulf %16, %17 : vector<16x80xf32>
    %cst_17 = arith.constant 0.000000e+00 : f32
    %19 = vector.broadcast %cst_17 : f32 to vector<16x80xf32>
    %20 = arith.cmpf oge, %18, %19 : vector<16x80xf32>
    %cst_18 = arith.constant 2.000000e-01 : f32
    %21 = vector.broadcast %cst_18 : f32 to vector<16x80xf32>
    %22 = arith.mulf %18, %21 : vector<16x80xf32>
    %23 = arith.select %20, %18, %22 : vector<16x80xi1>, vector<16x80xf32>
    %24 = arith.truncf %23 : vector<16x80xf32> to vector<16x80xbf16>
    %c0_19 = arith.constant 0 : index
    %c11_20 = arith.constant 11 : index
    %25 = vector.load %arg12[%c0_19, %c11_20] : memref<16x110xbf16, #tpu.memory_space<vmem>>, vector<16x80xbf16>
    tpu.vector_store %arg12[%c0_19, %c11_20], %24 {strides = array<i32>} : memref<16x110xbf16, #tpu.memory_space<vmem>>, vector<16x80xbf16>,
    %c0_21 = arith.constant 0 : index
    %c0_22 = arith.constant 0 : index
    %26 = vector.load %arg12[%c0_21, %c0_22] : memref<16x110xbf16, #tpu.memory_space<vmem>>, vector<16x80xbf16>
    %c0_23 = arith.constant 0 : index
    %c1_24 = arith.constant 1 : index
    %27 = vector.load %arg12[%c0_23, %c1_24] : memref<16x110xbf16, #tpu.memory_space<vmem>>, vector<16x80xbf16>
    %c0_25 = arith.constant 0 : index
    %c2 = arith.constant 2 : index
    %28 = vector.load %arg12[%c0_25, %c2] : memref<16x110xbf16, #tpu.memory_space<vmem>>, vector<16x80xbf16>
    %c0_26 = arith.constant 0 : index
    %c10_27 = arith.constant 10 : index
    %29 = vector.load %arg12[%c0_26, %c10_27] : memref<16x110xbf16, #tpu.memory_space<vmem>>, vector<16x80xbf16>
    %c0_28 = arith.constant 0 : index
    %c11_29 = arith.constant 11 : index
    %30 = vector.load %arg12[%c0_28, %c11_29] : memref<16x110xbf16, #tpu.memory_space<vmem>>, vector<16x80xbf16>
    %c0_30 = arith.constant 0 : index
    %c12 = arith.constant 12 : index
    %31 = vector.load %arg12[%c0_30, %c12] : memref<16x110xbf16, #tpu.memory_space<vmem>>, vector<16x80xbf16>
    %c0_31 = arith.constant 0 : index
    %c20 = arith.constant 20 : index
    %32 = vector.load %arg12[%c0_31, %c20] : memref<16x110xbf16, #tpu.memory_space<vmem>>, vector<16x80xbf16>
    %c0_32 = arith.constant 0 : index
    %c21 = arith.constant 21 : index
    %33 = vector.load %arg12[%c0_32, %c21] : memref<16x110xbf16, #tpu.memory_space<vmem>>, vector<16x80xbf16>
    %c0_33 = arith.constant 0 : index
    %c22 = arith.constant 22 : index
    %34 = vector.load %arg12[%c0_33, %c22] : memref<16x110xbf16, #tpu.memory_space<vmem>>, vector<16x80xbf16>
    %35 = tpu.concatenate %26, %27, %28, %29, %30, %31, %32, %33, %34 in 0 : vector<16x80xbf16>, vector<16x80xbf16>, vector<16x80xbf16>, vector<16x80xbf16>, vector<16x80xbf16>, vector<16x80xbf16>, vector<16x80xbf16>, vector<16x80xbf16>, vector<16x80xbf16> -> vector<144x80xbf16>
    %c0_34 = arith.constant 0 : index
    %c0_35 = arith.constant 0 : index
    %36 = vector.load %arg5[%c0_34, %c0_35] : memref<16x144xbf16, #tpu.memory_space<vmem>>, vector<16x144xbf16>
    %cst_36 = arith.constant dense<0.000000e+00> : vector<16x80xf32>
    %37 = tpu.matmul %36, %35, %cst_36 {dimension_numbers = #tpu.dot_dimension_numbers<[1], [0], [0], [1], [0, 0, 1, 1], [], []>} : vector<16x144xbf16>, vector<144x80xbf16>, vector<16x80xf32> -> vector<16x80xf32>
    %c0_37 = arith.constant 0 : index
    %c0_38 = arith.constant 0 : index
    %38 = vector.load %arg6[%c0_37, %c0_38] : memref<16x1xf32, #tpu.memory_space<vmem>>, vector<16x1xf32>
    %39 = vector.broadcast %38 : vector<16x1xf32> to vector<16x80xf32>
    %40 = arith.addf %37, %39 : vector<16x80xf32>
    %41 = vector.broadcast %0 : vector<1x80xf32> to vector<16x80xf32>
    %42 = arith.mulf %40, %41 : vector<16x80xf32>
    %cst_39 = arith.constant 0.000000e+00 : f32
    %43 = vector.broadcast %cst_39 : f32 to vector<16x80xf32>
    %44 = arith.cmpf oge, %42, %43 : vector<16x80xf32>
    %cst_40 = arith.constant 2.000000e-01 : f32
    %45 = vector.broadcast %cst_40 : f32 to vector<16x80xf32>
    %46 = arith.mulf %42, %45 : vector<16x80xf32>
    %47 = arith.select %44, %42, %46 : vector<16x80xi1>, vector<16x80xf32>
    %48 = arith.truncf %47 : vector<16x80xf32> to vector<16x80xbf16>
    %c0_41 = arith.constant 0 : index
    %c11_42 = arith.constant 11 : index
    %49 = vector.load %arg12[%c0_41, %c11_42] : memref<16x110xbf16, #tpu.memory_space<vmem>>, vector<16x80xbf16>
    tpu.vector_store %arg12[%c0_41, %c11_42], %48 {strides = array<i32>} : memref<16x110xbf16, #tpu.memory_space<vmem>>, vector<16x80xbf16>,
    %c0_43 = arith.constant 0 : index
    %c0_44 = arith.constant 0 : index
    %50 = vector.load %arg12[%c0_43, %c0_44] : memref<16x110xbf16, #tpu.memory_space<vmem>>, vector<16x80xbf16>
    %c0_45 = arith.constant 0 : index
    %c1_46 = arith.constant 1 : index
    %51 = vector.load %arg12[%c0_45, %c1_46] : memref<16x110xbf16, #tpu.memory_space<vmem>>, vector<16x80xbf16>
    %c0_47 = arith.constant 0 : index
    %c2_48 = arith.constant 2 : index
    %52 = vector.load %arg12[%c0_47, %c2_48] : memref<16x110xbf16, #tpu.memory_space<vmem>>, vector<16x80xbf16>
    %c0_49 = arith.constant 0 : index
    %c10_50 = arith.constant 10 : index
    %53 = vector.load %arg12[%c0_49, %c10_50] : memref<16x110xbf16, #tpu.memory_space<vmem>>, vector<16x80xbf16>
    %c0_51 = arith.constant 0 : index
    %c11_52 = arith.constant 11 : index
    %54 = vector.load %arg12[%c0_51, %c11_52] : memref<16x110xbf16, #tpu.memory_space<vmem>>, vector<16x80xbf16>
    %c0_53 = arith.constant 0 : index
    %c12_54 = arith.constant 12 : index
    %55 = vector.load %arg12[%c0_53, %c12_54] : memref<16x110xbf16, #tpu.memory_space<vmem>>, vector<16x80xbf16>
    %c0_55 = arith.constant 0 : index
    %c20_56 = arith.constant 20 : index
    %56 = vector.load %arg12[%c0_55, %c20_56] : memref<16x110xbf16, #tpu.memory_space<vmem>>, vector<16x80xbf16>
    %c0_57 = arith.constant 0 : index
    %c21_58 = arith.constant 21 : index
    %57 = vector.load %arg12[%c0_57, %c21_58] : memref<16x110xbf16, #tpu.memory_space<vmem>>, vector<16x80xbf16>
    %c0_59 = arith.constant 0 : index
    %c22_60 = arith.constant 22 : index
    %58 = vector.load %arg12[%c0_59, %c22_60] : memref<16x110xbf16, #tpu.memory_space<vmem>>, vector<16x80xbf16>
    %59 = tpu.concatenate %50, %51, %52, %53, %54, %55, %56, %57, %58 in 0 : vector<16x80xbf16>, vector<16x80xbf16>, vector<16x80xbf16>, vector<16x80xbf16>, vector<16x80xbf16>, vector<16x80xbf16>, vector<16x80xbf16>, vector<16x80xbf16>, vector<16x80xbf16> -> vector<144x80xbf16>
    %c0_61 = arith.constant 0 : index
    %c0_62 = arith.constant 0 : index
    %60 = vector.load %arg7[%c0_61, %c0_62] : memref<16x144xbf16, #tpu.memory_space<vmem>>, vector<16x144xbf16>
    %cst_63 = arith.constant dense<0.000000e+00> : vector<16x80xf32>
    %61 = tpu.matmul %60, %59, %cst_63 {dimension_numbers = #tpu.dot_dimension_numbers<[1], [0], [0], [1], [0, 0, 1, 1], [], []>} : vector<16x144xbf16>, vector<144x80xbf16>, vector<16x80xf32> -> vector<16x80xf32>
    %c0_64 = arith.constant 0 : index
    %c0_65 = arith.constant 0 : index
    %62 = vector.load %arg8[%c0_64, %c0_65] : memref<16x1xf32, #tpu.memory_space<vmem>>, vector<16x1xf32>
    %63 = vector.broadcast %62 : vector<16x1xf32> to vector<16x80xf32>
    %64 = arith.addf %61, %63 : vector<16x80xf32>
    %65 = vector.broadcast %0 : vector<1x80xf32> to vector<16x80xf32>
    %66 = arith.mulf %64, %65 : vector<16x80xf32>
    %cst_66 = arith.constant 0.000000e+00 : f32
    %67 = vector.broadcast %cst_66 : f32 to vector<16x80xf32>
    %68 = arith.cmpf oge, %66, %67 : vector<16x80xf32>
    %cst_67 = arith.constant 2.000000e-01 : f32
    %69 = vector.broadcast %cst_67 : f32 to vector<16x80xf32>
    %70 = arith.mulf %66, %69 : vector<16x80xf32>
    %71 = arith.select %68, %66, %70 : vector<16x80xi1>, vector<16x80xf32>
    %72 = arith.truncf %71 : vector<16x80xf32> to vector<16x80xbf16>
    %c0_68 = arith.constant 0 : index
    %c11_69 = arith.constant 11 : index
    %73 = vector.load %arg12[%c0_68, %c11_69] : memref<16x110xbf16, #tpu.memory_space<vmem>>, vector<16x80xbf16>
    tpu.vector_store %arg12[%c0_68, %c11_69], %72 {strides = array<i32>} : memref<16x110xbf16, #tpu.memory_space<vmem>>, vector<16x80xbf16>,
    %c0_70 = arith.constant 0 : index
    %c0_71 = arith.constant 0 : index
    %74 = vector.load %arg12[%c0_70, %c0_71] : memref<16x110xbf16, #tpu.memory_space<vmem>>, vector<16x80xbf16>
    %c0_72 = arith.constant 0 : index
    %c1_73 = arith.constant 1 : index
    %75 = vector.load %arg12[%c0_72, %c1_73] : memref<16x110xbf16, #tpu.memory_space<vmem>>, vector<16x80xbf16>
    %c0_74 = arith.constant 0 : index
    %c2_75 = arith.constant 2 : index
    %76 = vector.load %arg12[%c0_74, %c2_75] : memref<16x110xbf16, #tpu.memory_space<vmem>>, vector<16x80xbf16>
    %c0_76 = arith.constant 0 : index
    %c10_77 = arith.constant 10 : index
    %77 = vector.load %arg12[%c0_76, %c10_77] : memref<16x110xbf16, #tpu.memory_space<vmem>>, vector<16x80xbf16>
    %c0_78 = arith.constant 0 : index
    %c11_79 = arith.constant 11 : index
    %78 = vector.load %arg12[%c0_78, %c11_79] : memref<16x110xbf16, #tpu.memory_space<vmem>>, vector<16x80xbf16>
    %c0_80 = arith.constant 0 : index
    %c12_81 = arith.constant 12 : index
    %79 = vector.load %arg12[%c0_80, %c12_81] : memref<16x110xbf16, #tpu.memory_space<vmem>>, vector<16x80xbf16>
    %c0_82 = arith.constant 0 : index
    %c20_83 = arith.constant 20 : index
    %80 = vector.load %arg12[%c0_82, %c20_83] : memref<16x110xbf16, #tpu.memory_space<vmem>>, vector<16x80xbf16>
    %c0_84 = arith.constant 0 : index
    %c21_85 = arith.constant 21 : index
    %81 = vector.load %arg12[%c0_84, %c21_85] : memref<16x110xbf16, #tpu.memory_space<vmem>>, vector<16x80xbf16>
    %c0_86 = arith.constant 0 : index
    %c22_87 = arith.constant 22 : index
    %82 = vector.load %arg12[%c0_86, %c22_87] : memref<16x110xbf16, #tpu.memory_space<vmem>>, vector<16x80xbf16>
    %83 = tpu.concatenate %74, %75, %76, %77, %78, %79, %80, %81, %82 in 0 : vector<16x80xbf16>, vector<16x80xbf16>, vector<16x80xbf16>, vector<16x80xbf16>, vector<16x80xbf16>, vector<16x80xbf16>, vector<16x80xbf16>, vector<16x80xbf16>, vector<16x80xbf16> -> vector<144x80xbf16>
    %c0_88 = arith.constant 0 : index
    %c0_89 = arith.constant 0 : index
    %84 = vector.load %arg9[%c0_88, %c0_89] : memref<16x144xbf16, #tpu.memory_space<vmem>>, vector<16x144xbf16>
    %cst_90 = arith.constant dense<0.000000e+00> : vector<16x80xf32>
    %85 = tpu.matmul %84, %83, %cst_90 {dimension_numbers = #tpu.dot_dimension_numbers<[1], [0], [0], [1], [0, 0, 1, 1], [], []>} : vector<16x144xbf16>, vector<144x80xbf16>, vector<16x80xf32> -> vector<16x80xf32>
    %c0_91 = arith.constant 0 : index
    %c0_92 = arith.constant 0 : index
    %86 = vector.load %arg10[%c0_91, %c0_92] : memref<16x1xf32, #tpu.memory_space<vmem>>, vector<16x1xf32>
    %87 = vector.broadcast %86 : vector<16x1xf32> to vector<16x80xf32>
    %88 = arith.addf %85, %87 : vector<16x80xf32>
    %89 = vector.broadcast %0 : vector<1x80xf32> to vector<16x80xf32>
    %90 = arith.mulf %88, %89 : vector<16x80xf32>
    %c0_93 = arith.constant 0 : index
    %c0_94 = arith.constant 0 : index
    %c0_95 = arith.constant 0 : index
    %91 = vector.load %arg11[%c0_93, %c0_94, %c0_95] : memref<1x16x80xf32, #tpu.memory_space<vmem>>, vector<1x16x80xf32>
    %92 = vector.shape_cast %91 : vector<1x16x80xf32> to vector<16x80xf32>
    %93 = vector.shape_cast %90 : vector<16x80xf32> to vector<1x16x80xf32>
    tpu.vector_store %arg11[%c0_93, %c0_94, %c0_95], %93 {strides = array<i32>} : memref<1x16x80xf32, #tpu.memory_space<vmem>>, vector<1x16x80xf32>,
    return
  }
  func.func @transform_0(%arg0: i32) -> (i32, i32, i32) {
    %c0_i32 = arith.constant 0 : i32
    %c0_i32_0 = arith.constant 0 : i32
    %c0_i32_1 = arith.constant 0 : i32
    return %arg0, %c0_i32, %c0_i32_0 : i32, i32, i32
  }
  func.func @transform_1(%arg0: i32) -> (i32, i32) {
    %c0_i32 = arith.constant 0 : i32
    %c0_i32_0 = arith.constant 0 : i32
    %c0_i32_1 = arith.constant 0 : i32
    return %c0_i32, %c0_i32_0 : i32, i32
  }
  func.func @transform_2(%arg0: i32) -> (i32, i32) {
    %c0_i32 = arith.constant 0 : i32
    %c0_i32_0 = arith.constant 0 : i32
    %c0_i32_1 = arith.constant 0 : i32
    return %c0_i32, %c0_i32_0 : i32, i32
  }
  func.func @transform_3(%arg0: i32) -> (i32, i32) {
    %c0_i32 = arith.constant 0 : i32
    %c0_i32_0 = arith.constant 0 : i32
    %c0_i32_1 = arith.constant 0 : i32
    return %c0_i32, %c0_i32_0 : i32, i32
  }
  func.func @transform_4(%arg0: i32) -> (i32, i32) {
    %c0_i32 = arith.constant 0 : i32
    %c0_i32_0 = arith.constant 0 : i32
    %c0_i32_1 = arith.constant 0 : i32
    return %c0_i32, %c0_i32_0 : i32, i32
  }
  func.func @transform_5(%arg0: i32) -> (i32, i32) {
    %c0_i32 = arith.constant 0 : i32
    %c0_i32_0 = arith.constant 0 : i32
    %c0_i32_1 = arith.constant 0 : i32
    return %c0_i32, %c0_i32_0 : i32, i32
  }
  func.func @transform_6(%arg0: i32) -> (i32, i32) {
    %c0_i32 = arith.constant 0 : i32
    %c0_i32_0 = arith.constant 0 : i32
    %c0_i32_1 = arith.constant 0 : i32
    return %c0_i32, %c0_i32_0 : i32, i32
  }
  func.func @transform_7(%arg0: i32) -> (i32, i32) {
    %c0_i32 = arith.constant 0 : i32
    %c0_i32_0 = arith.constant 0 : i32
    %c0_i32_1 = arith.constant 0 : i32
    return %c0_i32, %c0_i32_0 : i32, i32
  }
  func.func @transform_8(%arg0: i32) -> (i32, i32) {
    %c0_i32 = arith.constant 0 : i32
    %c0_i32_0 = arith.constant 0 : i32
    %c0_i32_1 = arith.constant 0 : i32
    return %c0_i32, %c0_i32_0 : i32, i32
  }
  func.func @transform_9(%arg0: i32) -> (i32, i32) {
    %c0_i32 = arith.constant 0 : i32
    %c0_i32_0 = arith.constant 0 : i32
    %c0_i32_1 = arith.constant 0 : i32
    return %c0_i32, %c0_i32_0 : i32, i32
  }
  func.func @transform_10(%arg0: i32) -> (i32, i32, i32) {
    %c0_i32 = arith.constant 0 : i32
    %c0_i32_0 = arith.constant 0 : i32
    %c0_i32_1 = arith.constant 0 : i32
    return %arg0, %c0_i32, %c0_i32_0 : i32, i32, i32
  }
}

</mosaic_0001>

<bundles_post_ra>
// kernel: tile.8
= control target key start
LH: loop header
LB: loop body
LE: loop exit
PB: predicated region body
PF: predicated region fallthrough
CT: control target
= control target key end

     0   :  { %s22_s0 = inlined_call_operand.vmem [shape: f32[10], index: 0, kind: input, shape index: {}]   ;;  %s23_s1 = inlined_call_operand.vmem [shape: f32[8,10], index: 1, kind: output, shape index: {}]  }
   0x1   :  { %v4_v0 = vld [vmem:[%s22_s0] ss:$0 sm:$0xff] }
   0x2   :  { %5 = vst [vmem:[%s23_s1] sm:$0xff] %v4_v0 }

// kernel: tile.9
= control target key start
LH: loop header
LB: loop body
LE: loop exit
PB: predicated region body
PF: predicated region fallthrough
CT: control target
= control target key end

     0   :  { %s67_s10 = smov 70   ;;  %s68_s11 = smov 50   ;;  %vm3_vm0 = vcmask 80896   ;;  %vm9_vm1 = vcmask 654896   ;;  %vm15_vm2 = vcmask 572896   ;;  %vm21_vm3 = vcmask 490896   ;;  %s111_s0 = inlined_call_operand.vmem [shape: f32[8,10], index: 0, kind: input, shape index: {}]   ;;  %s112_s1 = inlined_call_operand.vmem [shape: f32[1,80], index: 1, kind: output, shape index: {}]  }
   0x1   :  { %v53_v0 = vld [vmem:[%s111_s0 + $0x7] sm:$0x1]   ;;  %v55_v1 = vld [vmem:[%s111_s0 + $0x5] sm:$0x1]   ;;  %v54_v2 = vld [vmem:[%s111_s0 + $0x6] sm:$0x1]  }
   0x2   :  { %7 = vrot.lane.b32.xlu0 %v53_v0, %s67_s10  ;;  %19 = vrot.lane.b32.xlu1 %v55_v1, %s68_s11  ;;  %v56_v3 = vld [vmem:[%s111_s0 + $0x4] sm:$0x1]   ;;  %v2_v4 = vld [vmem:[%s111_s0] sm:$0x1]   ;;  %s69_s18 = smov 60   ;;  %s70_s19 = smov 40  }
   0x3   :  { %4 = vst.msk [vmem:[#allocation0] sm:$0x1] %vm3_vm0, %v2_v4   ;;  %v57_v5 = vld [vmem:[%s111_s0 + $0x3] sm:$0x1]   ;;  %v58_v6 = vld [vmem:[%s111_s0 + $0x2] sm:$0x1]  }
   0x4   :  { %s71_s24 = smov 30   ;;  %s72_s25 = smov 20   ;;  %v59_v7 = vld [vmem:[%s111_s0 + $0x1] sm:$0x1]   ;;  %vm27_vm4 = vcmask 408896   ;;  %vm33_vm5 = vcmask 326896  }
   0x5   :  { %s73_s0 = smov 10   ;;  %vm39_vm6 = vcmask 244896   ;;  %vm45_vm7 = vcmask 162896  }
   0x6   :  { %13 = vrot.lane.b32.xlu0 %v54_v2, %s69_s18  ;;  %25 = vrot.lane.b32.xlu1 %v56_v3, %s70_s19 }
   0xa   :  { %31 = vrot.lane.b32.xlu0 %v57_v5, %s71_s24  ;;  %37 = vrot.lane.b32.xlu1 %v58_v6, %s72_s25 }
   0xe   :  { %43 = vrot.lane.b32.xlu0 %v59_v7, %s73_s0 }
  0x74   :  { %v8_v8 = vpop.permute.xlu0 %7   ;;  %v20_v9 = vpop.permute.xlu1 %19  }
  0x75   :  { %10 = vst.msk [vmem:[#allocation0] sm:$0x1] %vm9_vm1, %v8_v8  }
  0x78   :  { %v14_v10 = vpop.permute.xlu0 %13   ;;  %v26_v11 = vpop.permute.xlu1 %25  }
  0x79   :  { %16 = vst.msk [vmem:[#allocation0] sm:$0x1] %vm15_vm2, %v14_v10  }
  0x7a   :  { %22 = vst.msk [vmem:[#allocation0] sm:$0x1] %vm21_vm3, %v20_v9  }
  0x7b   :  { %28 = vst.msk [vmem:[#allocation0] sm:$0x1] %vm27_vm4, %v26_v11  }
  0x7c   :  { %v32_v12 = vpop.permute.xlu0 %31   ;;  %v38_v13 = vpop.permute.xlu1 %37  }
  0x7d   :  { %34 = vst.msk [vmem:[#allocation0] sm:$0x1] %vm33_vm5, %v32_v12  }
  0x7e   :  { %40 = vst.msk [vmem:[#allocation0] sm:$0x1] %vm39_vm6, %v38_v13  }
  0x80   :  { %v44_v14 = vpop.permute.xlu0 %43  }
  0x81   :  { %46 = vst.msk [vmem:[#allocation0] sm:$0x1] %vm45_vm7, %v44_v14  }
  0x88   :  { %v50_v15 = vld [vmem:[#allocation0] sm:$0x1] }
  0x89   :  { %52 = vst [vmem:[%s112_s1] sm:$0x1] %v50_v15 }

// kernel: head_forward.1
= control target key start
LH: loop header
LB: loop body
LE: loop exit
PB: predicated region body
PF: predicated region fallthrough
CT: control target
= control target key end

     0   :  { %s985_s13 = smov 0   ;;  %s1130_s0 = inlined_call_operand.vmem [shape: bf16[2,16,100], index: 0, kind: input, shape index: {}]   ;;  %s1131_s1 = inlined_call_operand.vmem [shape: f32[1,80], index: 1, kind: input, shape index: {}]   ;;  %s1132_s2 = inlined_call_operand.vmem [shape: bf16[16,64], index: 2, kind: input, shape index: {}]   ;;  %s1133_s3 = inlined_call_operand.vmem [shape: f32[16,1], index: 3, kind: input, shape index: {}]   ;;  %s1134_s4 = inlined_call_operand.vmem [shape: bf16[16,144], index: 4, kind: input, shape index: {}]   ;;  %s1135_s5 = inlined_call_operand.vmem [shape: f32[16,1], index: 5, kind: input, shape index: {}]   ;;  %s1136_s6 = inlined_call_operand.vmem [shape: bf16[16,144], index: 6, kind: input, shape index: {}]   ;;  %s1137_s7 = inlined_call_operand.vmem [shape: f32[16,1], index: 7, kind: input, shape index: {}]   ;;  %s1138_s8 = inlined_call_operand.vmem [shape: bf16[16,144], index: 8, kind: input, shape index: {}]   ;;  %s1139_s9 = inlined_call_operand.vmem [shape: f32[16,1], index: 9, kind: input, shape index: {}]   ;;  %s1140_s10 = inlined_call_operand.vmem [shape: f32[2,16,80], index: 10, kind: output, shape index: {}]  }
   0x1 LB: > { %s834_s14 = sadd.s32 4294967295, %s916_s13   ;;  %p838_p0 = scmp.ge.s32.totalorder %s916_s13, 1  ;;  %s916_s13 = sphi %s985_s13, %s20_s13  }
   0x2   : > { %p312_p1 = scmp.lt.s32.totalorder %s916_s13, 3 }
   0x4   : > { %p313_p2 = pnand %p838_p0, %p312_p1 }
   0x5   : > { %p350_p3 = scmp.lt.s32.totalorder (!%p313_p2), %s834_s14, 1  ;;  %v918_v0 = vmov (!%p313_p2), 0.0   ;;  %vm919_vm0 = vmmov (!%p313_p2), 0   ;;  %v920_v2 = vmov (!%p313_p2), 0   ;;  %s921_s19 = smov (!%p313_p2), 127   ;;  %v383_v3 = vld [vmem:[%s1133_s3] sm:$0xff] (!%p313_p2) }
   0x6   : > { %316 = sbr.rel (%p313_p2) target bundleno = 1838 (0x72e), region = 60  ;;  %865 = vmatprep.subr.bf16.mxu0 (!%p313_p2), %v918_v0  ;;  %873 = vmatprep.mubr.msk.bf16.mxu0 (!%p313_p2), %vm919_vm0, %v918_v0  ;;  %s922_s20 = smov (!%p313_p2), 117   ;;  %v384_v4 = vld [vmem:[%s1133_s3 + $0x8] sm:$0xff] (!%p313_p2)  ;;  %v900_v8 = vld [vmem:[%s1132_s2] sm:$0xff] (!%p313_p2)   ;;  %vm400_vm1 = vcmask (!%p313_p2), 523264   ;;  %vm362_vm2 = vcmask (!%p313_p2), 900096  }
   0x7   : > { %897 = vset.pattern.permute.xlu1 (!%p313_p2), %v920_v2  ;;  %898 = vset.pattern.permute.xlu0 (!%p313_p2), %v920_v2  ;;  %s923_s23 = smov (!%p313_p2), 118   ;;  %363 = vst.msk [vmem:[#allocation2] sm:$0xff] (!%p313_p2), %vm362_vm2, %v920_v2  ;;  %v1019_v10 = vld [vmem:[%s1131_s1] ss:$0 sm:$0xff] (!%p313_p2)  ;;  %s924_s30 = smov (!%p313_p2), 11   ;;  %vm464_vm5 = vcmask (!%p313_p2), 744536  }
   0x8   : > { %519 = vmatprep.subr.bf16.mxu1 (!%p313_p2), %v920_v2  ;;  %s925_s11 = smov (!%p313_p2), 126   ;;  %s926_s12 = smov (!%p313_p2), 108   ;;  %v495_v27 = vld [vmem:[%s1135_s5 + $0x8] sm:$0xff] (!%p313_p2)  ;;  %v494_v28 = vld [vmem:[%s1135_s5] sm:$0xff] (!%p313_p2)  ;;  %vm515_vm6 = vcmask (!%p313_p2), 130048   ;;  %vm776_vm11 = vcmask (!%p313_p2), 654336  }
   0x9   : > { %s928_s16 = smov (!%p313_p2), 106   ;;  %s929_s17 = smov (!%p313_p2), 107   ;;  %v903_v29 = vld [vmem:[%s1134_s4 + $0x4] ss:$8 sps:$4 sm:$0xff] (!%p313_p2)   ;;  %v901_v38 = vld [vmem:[%s1134_s4] ss:$8 sps:$4 sm:$0xff] (!%p313_p2)  }
   0xa   : > { %849 = vmatprep.mubr.msk.bf16.mxu1 (!%p313_p2), %vm515_vm6, %v903_v29  ;;  %v603_v56 = vld [vmem:[%s1137_s7 + $0x8] sm:$0xff] (!%p313_p2)  ;;  %v602_v57 = vld [vmem:[%s1137_s7] sm:$0xff] (!%p313_p2) }
   0xb   : > { %v904_v58 = vld [vmem:[%s1136_s6 + $0x4] ss:$8 sps:$4 sm:$0xff] (!%p313_p2)  }
   0xd   : > { %s1142_s14 = smov (!%p350_p3, %s834_s14), 1 }
   0xe   : > { %s858_s15 = sshll.u32 %s1142_s14, 3 }
   0xf   : > { %s354_s18 = scalar_lea.vmem %s1130_s0, %s858_s15  ;;  %s927_s15 = smov 116  }
  0x10   : > { %v899_v1 = vld [vmem:[%s354_s18] sm:$0xff]  }
  0x11   : > { %372 = vrot.lane.b32.xlu0 %v899_v1, %s921_s19  ;;  %378 = vrot.lane.b32.xlu1 %v899_v1, %s922_s20 }
  0x12   : > { %866 = vmatpush3.bf16.msra.mxu0 %v899_v1 }
  0x13   : > { %867 = vmatprep.subr.bf16.mxu0 %v918_v0 }
  0x15   : > { %375 = vrot.lane.b32.xlu0 %v899_v1, %s923_s23  ;;  %387 = vperm.xlu1 %897, %v383_v3  }
  0x19   : > { %392 = vperm.xlu0 %898, %v384_v4   ;;  %v906_v4 = vld [vmem:[%s1136_s6] ss:$8 sps:$4 sm:$0xff]  }
  0x83   : > { %v373_v5 = vpop.permute.xlu0 %372  ;;  %v379_v7 = vpop.permute.xlu1 %378 }
  0x84   : > { %868 = vmatpush3.bf16.msra.mxu0 %v373_v5 }
  0x85   : > { %869 = vmatprep.subr.bf16.mxu0 %v918_v0 }
  0x87   : > { %v376_v6 = vpop.permute.xlu0 %375 }
  0x88   : > { %870 = vmatpush3.bf16.msra.mxu0 %v376_v6 }
  0x89   : > { %871 = vmatprep.subr.bf16.mxu0 %v918_v0 }
  0x8c   : > { %872 = vmatpush3.bf16.msra.mxu0 %v379_v7 }
  0x8d   : > { %626 = vmatprep.subr.bf16.mxu0 %v920_v2 }
  0x8f   : > { %874 = vmatmul.mubr.msk.bf16.vlgmr.msra.gmra.mrb[0].mxu0 %vm400_vm1, %v900_v8 }
  0x90   : > { %852 = vmatprep.mubr.msk.bf16.mxu0 %vm515_vm6, %v904_v58 }
  0x94   : > { %v388_v9 = vpop.permute.xlu1 %387 }
  0x98   : > { %v393_v12 = vpop.permute.xlu0 %392 }
 0x162   : > { %v438_v11 = vpop.f32.mrb[0].mxu0 }
 0x163   : > { %v439_v13 = vadd.f32 %v438_v11, %v388_v9  ;;  %v875_v14 = vpop.f32.mrb[1].mxu0 }
 0x164   : > { %v441_v15 = vpop.f32.mrb[2].mxu0 }
 0x165   : > { %v451_v16 = vmul.f32 %v1019_v10, %v439_v13  ;;  %v442_v17 = vadd.f32 %v441_v15, %v393_v12  ;;  %v876_v18 = vpop.f32.mrb[3].mxu0 }
 0x167   : > { %v455_v19 = vmul.f32 0.2, %v451_v16  ;;  %v452_v20 = vmul.f32 %v1019_v10, %v442_v17  ;;  %vm453_vm3 = vcmp.ge.f32.partialorder %v451_v16, 0.0 }
 0x169   : > { %vm454_vm4 = vcmp.ge.f32.partialorder %v452_v20, 0.0  ;;  %v456_v21 = vmul.f32 0.2, %v452_v20  ;;  %v457_v22 = vsel %vm453_vm3, %v451_v16, %v455_v19 }
 0x16b   : > { %v458_v23 = vsel %vm454_vm4, %v452_v20, %v456_v21 }
 0x16c   : > { %v459_v24 = vpack.c.bf16 %v458_v23, %v457_v22  ;;  %v710_v23 = vld [vmem:[%s1139_s9 + $0x8] sm:$0xff] }
 0x16e   : > { %461 = vrot.lane.b32.xlu1 %v459_v24, %s924_s30  ;;  %v709_v24 = vld [vmem:[%s1139_s9] sm:$0xff] }
 0x1e0   : > { %v462_v25 = vpop.permute.xlu1 %461 }
 0x1e1   : > { %465 = vst.msk [vmem:[#allocation2] sm:$0xff] %vm464_vm5, %v462_v25  ;;  %v907_v25 = vld [vmem:[%s1138_s8 + $0x4] ss:$8 sps:$4 sm:$0xff]  }
 0x1e8   : > { %v466_v26 = vld [vmem:[#allocation2] sm:$0xff] }
 0x1e9   : > { %471 = vrot.lane.b32.xlu0 %v466_v26, %s925_s11  ;;  %468 = vrot.lane.b32.xlu1 %v466_v26, %s921_s19 }
 0x1ea   : > { %520 = vmatpush1.bf16.msra.mxu1 %v466_v26 }
 0x1eb   : > { %521 = vmatprep.subr.bf16.mxu1 %v920_v2 }
 0x1ed   : > { %477 = vrot.lane.b32.xlu0 %v466_v26, %s922_s20  ;;  %474 = vrot.lane.b32.xlu1 %v466_v26, %s923_s23 }
 0x1f1   : > { %483 = vrot.lane.b32.xlu0 %v466_v26, %s926_s12  ;;  %480 = vrot.lane.b32.xlu1 %v466_v26, %s927_s15 }
 0x1f5   : > { %489 = vrot.lane.b32.xlu0 %v466_v26, %s928_s16  ;;  %486 = vrot.lane.b32.xlu1 %v466_v26, %s929_s17 }
 0x1f9   : > { %503 = vperm.xlu0 %898, %v495_v27   ;;  %498 = vperm.xlu1 %897, %v494_v28  }
 0x25b   : > { %v469_v30 = vpop.permute.xlu1 %468  ;;  %v472_v31 = vpop.permute.xlu0 %471 }
 0x25c   : > { %522 = vmatpush1.bf16.msra.mxu1 %v469_v30 }
 0x25d   : > { %523 = vmatprep.subr.bf16.mxu1 %v920_v2 }
 0x25f   : > { %v475_v32 = vpop.permute.xlu1 %474  ;;  %v478_v33 = vpop.permute.xlu0 %477 }
 0x260   : > { %524 = vmatpush1.bf16.msra.mxu1 %v472_v31 }
 0x261   : > { %525 = vmatprep.subr.bf16.mxu1 %v920_v2 }
 0x263   : > { %v481_v34 = vpop.permute.xlu1 %480  ;;  %v484_v35 = vpop.permute.xlu0 %483 }
 0x264   : > { %526 = vmatpush1.bf16.msra.mxu1 %v475_v32 }
 0x265   : > { %527 = vmatprep.subr.bf16.mxu1 %v920_v2 }
 0x267   : > { %v487_v36 = vpop.permute.xlu1 %486  ;;  %v490_v37 = vpop.permute.xlu0 %489 }
 0x268   : > { %528 = vmatpush1.bf16.msra.mxu1 %v478_v33 }
 0x269   : > { %529 = vmatprep.subr.bf16.mxu1 %v920_v2 }
 0x26c   : > { %530 = vmatpush1.bf16.msra.mxu1 %v481_v34  ;;  %v909_v34 = vld [vmem:[%s1138_s8] ss:$8 sps:$4 sm:$0xff]  }
 0x26d   : > { %531 = vmatprep.subr.bf16.mxu1 %v920_v2 }
 0x270   : > { %532 = vmatpush1.bf16.msra.mxu1 %v484_v35 }
 0x271   : > { %533 = vmatprep.subr.bf16.mxu1 %v920_v2 }
 0x274   : > { %534 = vmatpush1.bf16.msra.mxu1 %v487_v36 }
 0x275   : > { %535 = vmatprep.subr.bf16.mxu1 %v920_v2 }
 0x278   : > { %536 = vmatpush1.bf16.msra.mxu1 %v490_v37  ;;  %v499_v39 = vpop.permute.xlu1 %498  ;;  %v504_v43 = vpop.permute.xlu0 %503 }
 0x279   : > { %733 = vmatprep.subr.bf16.mxu1 %v920_v2 }
 0x27b   : > { %552 = vmatmul.mubr.bf16.vlgmr.msra.gmra.mrb[0].mxu1 %v901_v38 }
 0x27c   : > { %855 = vmatprep.mubr.msk.bf16.mxu1 %vm515_vm6, %v907_v25 }
 0x34e   : > { %v553_v40 = vpop.f32.mrb[0].mxu1 }
 0x34f   : > { %v554_v41 = vadd.f32 %v553_v40, %v499_v39  ;;  %v555_v42 = vpop.f32.mrb[1].mxu1 }
 0x350   : > { %v556_v44 = vpop.f32.mrb[2].mxu1 }
 0x351   : > { %v560_v45 = vmul.f32 %v1019_v10, %v554_v41  ;;  %v557_v46 = vadd.f32 %v556_v44, %v504_v43  ;;  %v558_v47 = vpop.f32.mrb[3].mxu1 }
 0x353   : > { %v564_v48 = vmul.f32 0.2, %v560_v45  ;;  %v561_v49 = vmul.f32 %v1019_v10, %v557_v46  ;;  %vm562_vm7 = vcmp.ge.f32.partialorder %v560_v45, 0.0 }
 0x355   : > { %vm563_vm8 = vcmp.ge.f32.partialorder %v561_v49, 0.0  ;;  %v565_v50 = vmul.f32 0.2, %v561_v49  ;;  %v566_v51 = vsel %vm562_vm7, %v560_v45, %v564_v48 }
 0x357   : > { %v567_v52 = vsel %vm563_vm8, %v561_v49, %v565_v50 }
 0x358   : > { %v568_v53 = vpack.c.bf16 %v567_v52, %v566_v51 }
 0x35a   : > { %570 = vrot.lane.b32.xlu1 %v568_v53, %s924_s30 }
 0x3cc   : > { %v571_v54 = vpop.permute.xlu1 %570 }
 0x3cd   : > { %573 = vst.msk [vmem:[#allocation2] sm:$0xff] %vm464_vm5, %v571_v54 }
 0x3d4   : > { %v574_v55 = vld [vmem:[#allocation2] sm:$0xff] }
 0x3d5   : > { %579 = vrot.lane.b32.xlu1 %v574_v55, %s925_s11  ;;  %576 = vrot.lane.b32.xlu0 %v574_v55, %s921_s19 }
 0x3d6   : > { %627 = vmatpush1.bf16.msra.mxu0 %v574_v55 }
 0x3d7   : > { %628 = vmatprep.subr.bf16.mxu0 %v920_v2 }
 0x3d9   : > { %585 = vrot.lane.b32.xlu1 %v574_v55, %s922_s20  ;;  %582 = vrot.lane.b32.xlu0 %v574_v55, %s923_s23 }
 0x3dd   : > { %591 = vrot.lane.b32.xlu1 %v574_v55, %s926_s12  ;;  %588 = vrot.lane.b32.xlu0 %v574_v55, %s927_s15 }
 0x3e1   : > { %597 = vrot.lane.b32.xlu1 %v574_v55, %s928_s16  ;;  %594 = vrot.lane.b32.xlu0 %v574_v55, %s929_s17 }
 0x3e5   : > { %611 = vperm.xlu1 %897, %v603_v56   ;;  %606 = vperm.xlu0 %898, %v602_v57  }
 0x447   : > { %v577_v59 = vpop.permute.xlu0 %576  ;;  %v580_v60 = vpop.permute.xlu1 %579 }
 0x448   : > { %629 = vmatpush1.bf16.msra.mxu0 %v577_v59 }
 0x449   : > { %630 = vmatprep.subr.bf16.mxu0 %v920_v2 }
 0x44b   : > { %v583_v61 = vpop.permute.xlu0 %582  ;;  %v586_v62 = vpop.permute.xlu1 %585 }
 0x44c   : > { %631 = vmatpush1.bf16.msra.mxu0 %v580_v60 }
 0x44d   : > { %632 = vmatprep.subr.bf16.mxu0 %v920_v2 }
 0x44f   : > { %v589_v63 = vpop.permute.xlu0 %588  ;;  %v592_v0 = vpop.permute.xlu1 %591 }
 0x450   : > { %633 = vmatpush1.bf16.msra.mxu0 %v583_v61 }
 0x451   : > { %634 = vmatprep.subr.bf16.mxu0 %v920_v2 }
 0x453   : > { %v595_v1 = vpop.permute.xlu0 %594  ;;  %v598_v3 = vpop.permute.xlu1 %597 }
 0x454   : > { %635 = vmatpush1.bf16.msra.mxu0 %v586_v62 }
 0x455   : > { %636 = vmatprep.subr.bf16.mxu0 %v920_v2 }
 0x458   : > { %637 = vmatpush1.bf16.msra.mxu0 %v589_v63 }
 0x459   : > { %638 = vmatprep.subr.bf16.mxu0 %v920_v2 }
 0x45c   : > { %639 = vmatpush1.bf16.msra.mxu0 %v592_v0 }
 0x45d   : > { %640 = vmatprep.subr.bf16.mxu0 %v920_v2 }
 0x460   : > { %641 = vmatpush1.bf16.msra.mxu0 %v595_v1 }
 0x461   : > { %642 = vmatprep.subr.bf16.mxu0 %v920_v2 }
 0x464   : > { %643 = vmatpush1.bf16.msra.mxu0 %v598_v3  ;;  %v607_v5 = vpop.permute.xlu0 %606  ;;  %v612_v9 = vpop.permute.xlu1 %611 }
 0x467   : > { %659 = vmatmul.mubr.bf16.vlgmr.msra.gmra.mrb[4].mxu0 %v906_v4 }
 0x53a   : > { %v660_v6 = vpop.f32.mrb[4].mxu0 }
 0x53b   : > { %v661_v7 = vadd.f32 %v660_v6, %v607_v5  ;;  %v662_v8 = vpop.f32.mrb[5].mxu0 }
 0x53c   : > { %v663_v11 = vpop.f32.mrb[6].mxu0 }
 0x53d   : > { %v667_v12 = vmul.f32 %v1019_v10, %v661_v7  ;;  %v664_v13 = vadd.f32 %v663_v11, %v612_v9  ;;  %v665_v14 = vpop.f32.mrb[7].mxu0 }
 0x53f   : > { %v671_v15 = vmul.f32 0.2, %v667_v12  ;;  %v668_v16 = vmul.f32 %v1019_v10, %v664_v13  ;;  %vm669_vm9 = vcmp.ge.f32.partialorder %v667_v12, 0.0 }
 0x541   : > { %vm670_vm10 = vcmp.ge.f32.partialorder %v668_v16, 0.0  ;;  %v672_v17 = vmul.f32 0.2, %v668_v16  ;;  %v673_v18 = vsel %vm669_vm9, %v667_v12, %v671_v15 }
 0x543   : > { %v674_v19 = vsel %vm670_vm10, %v668_v16, %v672_v17 }
 0x544   : > { %v675_v20 = vpack.c.bf16 %v674_v19, %v673_v18 }
 0x546   : > { %677 = vrot.lane.b32.xlu0 %v675_v20, %s924_s30 }
 0x5b8   : > { %v678_v21 = vpop.permute.xlu0 %677 }
 0x5b9   : > { %680 = vst.msk [vmem:[#allocation2] sm:$0xff] %vm464_vm5, %v678_v21 }
 0x5c0   : > { %v681_v22 = vld [vmem:[#allocation2] sm:$0xff] }
 0x5c1   : > { %686 = vrot.lane.b32.xlu0 %v681_v22, %s925_s11  ;;  %683 = vrot.lane.b32.xlu1 %v681_v22, %s921_s19 }
 0x5c2   : > { %734 = vmatpush1.bf16.msra.mxu1 %v681_v22 }
 0x5c3   : > { %735 = vmatprep.subr.bf16.mxu1 %v920_v2 }
 0x5c5   : > { %692 = vrot.lane.b32.xlu0 %v681_v22, %s922_s20  ;;  %689 = vrot.lane.b32.xlu1 %v681_v22, %s923_s23 }
 0x5c9   : > { %698 = vrot.lane.b32.xlu0 %v681_v22, %s926_s12  ;;  %695 = vrot.lane.b32.xlu1 %v681_v22, %s927_s15  ;;  %s859_s15 = sshll.u32 %s1142_s14, 4 }
 0x5ca   : > { %s359_s18 = scalar_lea.vmem %s1140_s10, %s859_s15 }
 0x5cd   : > { %704 = vrot.lane.b32.xlu0 %v681_v22, %s928_s16  ;;  %701 = vrot.lane.b32.xlu1 %v681_v22, %s929_s17 }
 0x5d1   : > { %718 = vperm.xlu0 %898, %v710_v23   ;;  %713 = vperm.xlu1 %897, %v709_v24  }
 0x633   : > { %v684_v26 = vpop.permute.xlu1 %683  ;;  %v687_v27 = vpop.permute.xlu0 %686 }
 0x634   : > { %736 = vmatpush1.bf16.msra.mxu1 %v684_v26 }
 0x635   : > { %737 = vmatprep.subr.bf16.mxu1 %v920_v2 }
 0x637   : > { %v690_v28 = vpop.permute.xlu1 %689  ;;  %v693_v29 = vpop.permute.xlu0 %692 }
 0x638   : > { %738 = vmatpush1.bf16.msra.mxu1 %v687_v27 }
 0x639   : > { %739 = vmatprep.subr.bf16.mxu1 %v920_v2 }
 0x63b   : > { %v696_v30 = vpop.permute.xlu1 %695  ;;  %v699_v31 = vpop.permute.xlu0 %698 }
 0x63c   : > { %740 = vmatpush1.bf16.msra.mxu1 %v690_v28 }
 0x63d   : > { %741 = vmatprep.subr.bf16.mxu1 %v920_v2 }
 0x63f   : > { %v702_v32 = vpop.permute.xlu1 %701  ;;  %v705_v33 = vpop.permute.xlu0 %704 }
 0x640   : > { %742 = vmatpush1.bf16.msra.mxu1 %v693_v29 }
 0x641   : > { %743 = vmatprep.subr.bf16.mxu1 %v920_v2 }
 0x644   : > { %744 = vmatpush1.bf16.msra.mxu1 %v696_v30 }
 0x645   : > { %745 = vmatprep.subr.bf16.mxu1 %v920_v2 }
 0x648   : > { %746 = vmatpush1.bf16.msra.mxu1 %v699_v31 }
 0x649   : > { %747 = vmatprep.subr.bf16.mxu1 %v920_v2 }
 0x64c   : > { %748 = vmatpush1.bf16.msra.mxu1 %v702_v32 }
 0x64d   : > { %749 = vmatprep.subr.bf16.mxu1 %v920_v2 }
 0x650   : > { %750 = vmatpush1.bf16.msra.mxu1 %v705_v33  ;;  %v714_v35 = vpop.permute.xlu1 %713  ;;  %v719_v39 = vpop.permute.xlu0 %718 }
 0x653   : > { %766 = vmatmul.mubr.bf16.vlgmr.msra.gmra.mrb[4].mxu1 %v909_v34 }
 0x726   : > { %v767_v36 = vpop.f32.mrb[4].mxu1 }
 0x727   : > { %v768_v37 = vadd.f32 %v767_v36, %v714_v35  ;;  %v769_v38 = vpop.f32.mrb[5].mxu1 }
 0x728   : > { %v770_v40 = vpop.f32.mrb[6].mxu1 }
 0x729   : > { %v774_v2 = vmul.f32 %v1019_v10, %v768_v37  ;;  %v771_v41 = vadd.f32 %v770_v40, %v719_v39  ;;  %v772_v42 = vpop.f32.mrb[7].mxu1 }
 0x72b   : > { %777 = vst.msk [vmem:[%s359_s18] sm:$0xff] %vm776_vm11, %v774_v2  ;;  %v775_v43 = vmul.f32 %v1019_v10, %v771_v41 }
 0x72d   : > { %778 = vst.msk [vmem:[%s359_s18 + $0x8] sm:$0xff] %vm776_vm11, %v775_v43 }
 0x72e PF: > { %s20_s13 = sadd.s32 1, %s916_s13  }
 0x72f   : > { %p17_p4 = scmp.ge.s32.totalorder %s20_s13, 4  }
 0x731   :  { %19 = sbr.rel (!%p17_p4) target bundleno = 1 (0x1), region = 90 }

</bundles_post_ra>
